<compile_context>
chip_gen: v7x
topology: tpu7x:2x2x1
jax: 0.10.0
libtpu: 0.0.40
codegen_flags: <defaults>
</compile_context>

<pallas_src>
import math

import jax
import jax.numpy as jnp
from jax.experimental import pallas as pl
from jax.experimental.pallas import tpu as pltpu

LANES = 128            # lane width
SUB = 8                # sublane width / accumulator rows
MAX_TILE_ROWS_X = 4096 # 4096 x 128 f32 = 2 MiB per x_hat/target block
MAX_TILE_ROWS_L = 2048 # 1 MiB per likelihood block
NUM_CORES = 2          # parallel grid axis (both TCs on v7x; harmless on 1-TC chips)


def _round_up(n, m):
    return (n + m - 1) // m * m


def _to_slab(x, pad_value=0.0):
    """Flatten to 1-D (layout-preserving) and view as (rows, 128).

    Pads (a copy) only when the element count is not a multiple of 128; the
    pad value is chosen so padded lanes contribute exactly 0 to the reduction
    (0 for squared differences, 1 for log-likelihoods), so no lane mask is
    needed in the kernel.  Returns (slab, n_valid_elements).
    """
    flat = x.reshape(-1)
    n = int(flat.shape[0])
    rem = (-n) % LANES
    if rem:
        flat = jnp.pad(flat, (0, rem), constant_values=pad_value)
    return flat.reshape(-1, LANES), n


def _build_fused_reduction(rows_x, tile_rows_x, rows_l, tile_rows_l):
    """Fused pallas_call computing
         sum((x_hat - target)^2)  and  sum(log(likelihoods))
       as two (NUM_CORES*8, 128) partial-sum slabs (reduced in the wrapper)."""
    tiles_x = pl.cdiv(rows_x, tile_rows_x)
    tiles_l = pl.cdiv(rows_l, tile_rows_l)
    tiles_per_core = pl.cdiv(max(tiles_x, tiles_l), NUM_CORES)

    # Valid row counts inside the LAST tile of each slab (static ints).
    x_tail_rows = rows_x - (tiles_x - 1) * tile_rows_x
    l_tail_rows = rows_l - (tiles_l - 1) * tile_rows_l

    def kernel(xh_ref, tg_ref, lk_ref, mse_ref, lg_ref):
        c = pl.program_id(0)          # parallel (core) axis
        j = pl.program_id(1)          # arbitrary (reduction) axis
        t = c * tiles_per_core + j    # global tile index

        @pl.when(j == 0)
        def _():
            mse_ref[...] = jnp.zeros_like(mse_ref)
            lg_ref[...] = jnp.zeros_like(lg_ref)

        def row_mask(tile_rows, valid_rows):
            r = jax.lax.broadcasted_iota(jnp.int32, (tile_rows, LANES), 0)
            return r < valid_rows

        def sq_partial(mask):
            d = xh_ref[...].astype(jnp.float32) - tg_ref[...].astype(jnp.float32)
            if mask is not None:
                d = jnp.where(mask, d, 0.0)
            # fold the tile down to (8,128) with VPU-only adds
            return (d * d).reshape(tile_rows_x // SUB, SUB, LANES).sum(axis=0)

        def log_partial(mask):
            v = lk_ref[...].astype(jnp.float32)
            if mask is not None:
                v = jnp.where(mask, v, 1.0)   # log(1) = 0 on invalid rows
            return jnp.log(v).reshape(tile_rows_l // SUB, SUB, LANES).sum(axis=0)

        # ---- squared-difference contribution ----
        if x_tail_rows == tile_rows_x:          # tail is full: no mask needed
            @pl.when(t < tiles_x)
            def _():
                mse_ref[...] += sq_partial(None)
        else:
            @pl.when(t < tiles_x - 1)           # interior tiles: fully valid
            def _():
                mse_ref[...] += sq_partial(None)

            @pl.when(t == tiles_x - 1)          # tail tile: mask invalid rows
            def _():
                mse_ref[...] += sq_partial(row_mask(tile_rows_x, x_tail_rows))

        # ---- log-likelihood contribution ----
        if l_tail_rows == tile_rows_l:
            @pl.when(t < tiles_l)
            def _():
                lg_ref[...] += log_partial(None)
        else:
            @pl.when(t < tiles_l - 1)
            def _():
                lg_ref[...] += log_partial(None)

            @pl.when(t == tiles_l - 1)
            def _():
                lg_ref[...] += log_partial(row_mask(tile_rows_l, l_tail_rows))

    # Clamped index maps: once a slab is exhausted the same block stays
    # resident (Pallas skips re-DMA of an unchanged block index).
    def x_map(c, j):
        return (jnp.minimum(c * tiles_per_core + j, tiles_x - 1), 0)

    def l_map(c, j):
        return (jnp.minimum(c * tiles_per_core + j, tiles_l - 1), 0)

    return pl.pallas_call(
        kernel,
        out_shape=(
            jax.ShapeDtypeStruct((NUM_CORES * SUB, LANES), jnp.float32),
            jax.ShapeDtypeStruct((NUM_CORES * SUB, LANES), jnp.float32),
        ),
        grid=(NUM_CORES, tiles_per_core),
        in_specs=[
            pl.BlockSpec((tile_rows_x, LANES), x_map),
            pl.BlockSpec((tile_rows_x, LANES), x_map),
            pl.BlockSpec((tile_rows_l, LANES), l_map),
        ],
        out_specs=(
            pl.BlockSpec((SUB, LANES), lambda c, j: (c, 0)),
            pl.BlockSpec((SUB, LANES), lambda c, j: (c, 0)),
        ),
        compiler_params=pltpu.CompilerParams(
            dimension_semantics=("parallel", "arbitrary"),
        ),
    )


# ---------------------------------------------------------------------------
# RateDistortionLoss forward
# ---------------------------------------------------------------------------
def rate_distortion_loss(output, target, lmbda=0.01):
    """output = {'x_hat': (N,C,H,W), 'likelihoods': {name: array, ...}}"""
    N, C, H, W = target.shape
    num_pixels = N * H * W
    total_elems = N * C * H * W

    x_slab, n_x = _to_slab(output["x_hat"], pad_value=0.0)
    t_slab, n_t = _to_slab(target, pad_value=0.0)
    assert n_x == n_t, "x_hat and target must have the same number of elements"

    liks = list(output["likelihoods"].values())
    if liks:
        flats = [l.reshape(-1).astype(jnp.float32) for l in liks]
        lik_flat = flats[0] if len(flats) == 1 else jnp.concatenate(flats)
        lik_slab, _ = _to_slab(lik_flat, pad_value=1.0)
    else:
        # Degenerate case: no likelihoods -> all-ones slab (log 1 = 0, bpp = 0).
        lik_slab = jnp.ones((SUB, LANES), jnp.float32)

    rows_x = int(x_slab.shape[0])
    rows_l = int(lik_slab.shape[0])
    tile_rows_x = min(MAX_TILE_ROWS_X, _round_up(rows_x, SUB))
    tile_rows_l = min(MAX_TILE_ROWS_L, _round_up(rows_l, SUB))

    call = _build_fused_reduction(rows_x, tile_rows_x, rows_l, tile_rows_l)
    mse_part, log_part = call(x_slab, t_slab, lik_slab)

    # Tiny final cross-lane reduce (2 x 8 KiB) in plain XLA.
    sq_sum = jnp.sum(mse_part)
    log_sum = jnp.sum(log_part)

    bpp_loss = log_sum / (-math.log(2) * num_pixels)
    mse_loss = sq_sum / jnp.float32(total_elems)
    loss = lmbda * (255.0 ** 2) * mse_loss + bpp_loss
    return {"bpp_loss": bpp_loss, "mse_loss": mse_loss, "loss": loss}


# ---------------------------------------------------------------------------
# Main
# ---------------------------------------------------------------------------
if __name__ == "__main__":
    key = jax.random.PRNGKey(0)
    k1, k2, k3, k4 = jax.random.split(key, 4)

    # Small shapes consistent with the forward pass (NCHW image + latents).
    N, C, H, W = 2, 3, 16, 16
    target = jax.random.uniform(k1, (N, C, H, W), dtype=jnp.float32)
    x_hat = target + 0.05 * jax.random.normal(k2, (N, C, H, W),
                                              dtype=jnp.float32)

    # Likelihoods must be in (0, 1]; two entropy-model outputs ('y' and 'z').
    y_lik = jax.random.uniform(k3, (N, 8, 4, 4), dtype=jnp.float32,
                               minval=0.05, maxval=1.0)
    z_lik = jax.random.uniform(k4, (N, 4, 2, 2), dtype=jnp.float32,
                               minval=0.05, maxval=1.0)

    output = {"x_hat": x_hat, "likelihoods": {"y": y_lik, "z": z_lik}}

    out = rate_distortion_loss(output, target, lmbda=0.01)
    out = jax.tree_util.tree_map(jax.block_until_ready, out)

    # Reference check in plain JAX (same math, no Pallas).
    num_pixels = N * H * W
    bpp_ref = (jnp.sum(jnp.log(y_lik)) + jnp.sum(jnp.log(z_lik))) / (
        -math.log(2) * num_pixels
    )
    mse_ref = jnp.mean((x_hat - target) ** 2)
    loss_ref = 0.01 * 255.0 ** 2 * mse_ref + bpp_ref

    assert jnp.allclose(out["bpp_loss"], bpp_ref, rtol=1e-5, atol=1e-5)
    assert jnp.allclose(out["mse_loss"], mse_ref, rtol=1e-5, atol=1e-6)
    assert jnp.allclose(out["loss"], loss_ref, rtol=1e-5, atol=1e-5)

    print("KERNEL_OK")
</pallas_src>

<mosaic_0001>
module attributes {stable_mosaic.version = 11 : i64} {
  func.func @kernel(%arg0: i32, %arg1: i32, %arg2: memref<16x128xf32, #tpu.memory_space<vmem>>, %arg3: memref<16x128xf32, #tpu.memory_space<vmem>>, %arg4: memref<8x128xf32, #tpu.memory_space<vmem>>, %arg5: memref<8x128xf32, #tpu.memory_space<vmem>>, %arg6: memref<8x128xf32, #tpu.memory_space<vmem>>) attributes {dimension_semantics = [#tpu.dimension_semantics<parallel>, #tpu.dimension_semantics<arbitrary>], iteration_bounds = array<i64: 2, 1>, scalar_prefetch = 0 : i64, scratch_operands = 0 : i64, tpu.core_type = #tpu.core_type<tc>, window_params = [{transform_indices = @transform_0, window_bounds = array<i64: 16, 128>}, {transform_indices = @transform_1, window_bounds = array<i64: 16, 128>}, {transform_indices = @transform_2, window_bounds = array<i64: 8, 128>}, {transform_indices = @transform_3, window_bounds = array<i64: 8, 128>}, {transform_indices = @transform_4, window_bounds = array<i64: 8, 128>}]} {
    %c1_i32 = arith.constant 1 : i32
    %0 = arith.muli %arg0, %c1_i32 : i32
    %1 = arith.addi %0, %arg1 : i32
    %c0_i32 = arith.constant 0 : i32
    %2 = arith.cmpi eq, %arg1, %c0_i32 : i32
    %3 = arith.extui %2 : i1 to i32
    %c0_i32_0 = arith.constant 0 : i32
    %4 = arith.cmpi ne, %3, %c0_i32_0 : i32
    scf.if %4 {
      %cst = arith.constant 0.000000e+00 : f32
      %17 = vector.broadcast %cst : f32 to vector<8x128xf32>
      %c0 = arith.constant 0 : index
      %c0_9 = arith.constant 0 : index
      %18 = vector.load %arg5[%c0, %c0_9] : memref<8x128xf32, #tpu.memory_space<vmem>>, vector<8x128xf32>
      tpu.vector_store %arg5[%c0, %c0_9], %17 {strides = array<i32>} : memref<8x128xf32, #tpu.memory_space<vmem>>, vector<8x128xf32>,
      %cst_10 = arith.constant 0.000000e+00 : f32
      %19 = vector.broadcast %cst_10 : f32 to vector<8x128xf32>
      %c0_11 = arith.constant 0 : index
      %c0_12 = arith.constant 0 : index
      %20 = vector.load %arg6[%c0_11, %c0_12] : memref<8x128xf32, #tpu.memory_space<vmem>>, vector<8x128xf32>
      tpu.vector_store %arg6[%c0_11, %c0_12], %19 {strides = array<i32>} : memref<8x128xf32, #tpu.memory_space<vmem>>, vector<8x128xf32>,
    } else {
    }
    %c0_i32_1 = arith.constant 0 : i32
    %5 = arith.cmpi slt, %1, %c0_i32_1 : i32
    %6 = arith.extui %5 : i1 to i32
    %c0_i32_2 = arith.constant 0 : i32
    %7 = arith.cmpi ne, %6, %c0_i32_2 : i32
    scf.if %7 {
      %c0 = arith.constant 0 : index
      %c0_9 = arith.constant 0 : index
      %17 = vector.load %arg5[%c0, %c0_9] : memref<8x128xf32, #tpu.memory_space<vmem>>, vector<8x128xf32>
      %c0_10 = arith.constant 0 : index
      %c0_11 = arith.constant 0 : index
      %18 = vector.load %arg2[%c0_10, %c0_11] : memref<16x128xf32, #tpu.memory_space<vmem>>, vector<16x128xf32>
      %c0_12 = arith.constant 0 : index
      %c0_13 = arith.constant 0 : index
      %19 = vector.load %arg3[%c0_12, %c0_13] : memref<16x128xf32, #tpu.memory_space<vmem>>, vector<16x128xf32>
      %20 = arith.subf %18, %19 : vector<16x128xf32>
      %21 = arith.mulf %20, %20 : vector<16x128xf32>
      %22 = vector.shape_cast %21 : vector<16x128xf32> to vector<2x8x128xf32>
      %cst = arith.constant dense<0.000000e+00> : vector<8x128xf32>
      %23 = vector.multi_reduction <add>, %22, %cst [0] : vector<2x8x128xf32> to vector<8x128xf32>
      %24 = arith.addf %17, %23 : vector<8x128xf32>
      %c0_14 = arith.constant 0 : index
      %c0_15 = arith.constant 0 : index
      %25 = vector.load %arg5[%c0_14, %c0_15] : memref<8x128xf32, #tpu.memory_space<vmem>>, vector<8x128xf32>
      tpu.vector_store %arg5[%c0_14, %c0_15], %24 {strides = array<i32>} : memref<8x128xf32, #tpu.memory_space<vmem>>, vector<8x128xf32>,
    } else {
    }
    %c0_i32_3 = arith.constant 0 : i32
    %8 = arith.cmpi eq, %1, %c0_i32_3 : i32
    %9 = arith.extui %8 : i1 to i32
    %c0_i32_4 = arith.constant 0 : i32
    %10 = arith.cmpi ne, %9, %c0_i32_4 : i32
    scf.if %10 {
      %c0 = arith.constant 0 : index
      %c0_9 = arith.constant 0 : index
      %17 = vector.load %arg5[%c0, %c0_9] : memref<8x128xf32, #tpu.memory_space<vmem>>, vector<8x128xf32>
      %18 = tpu.iota {dimensions = array<i32: 0>} : vector<16x128xi32>
      %c12_i32 = arith.constant 12 : i32
      %19 = vector.broadcast %c12_i32 : i32 to vector<16x128xi32>
      %20 = arith.cmpi slt, %18, %19 : vector<16x128xi32>
      %c0_10 = arith.constant 0 : index
      %c0_11 = arith.constant 0 : index
      %21 = vector.load %arg2[%c0_10, %c0_11] : memref<16x128xf32, #tpu.memory_space<vmem>>, vector<16x128xf32>
      %c0_12 = arith.constant 0 : index
      %c0_13 = arith.constant 0 : index
      %22 = vector.load %arg3[%c0_12, %c0_13] : memref<16x128xf32, #tpu.memory_space<vmem>>, vector<16x128xf32>
      %23 = arith.subf %21, %22 : vector<16x128xf32>
      %cst = arith.constant 0.000000e+00 : f32
      %24 = vector.broadcast %cst : f32 to vector<16x128xf32>
      %25 = arith.select %20, %23, %24 : vector<16x128xi1>, vector<16x128xf32>
      %26 = arith.mulf %25, %25 : vector<16x128xf32>
      %27 = vector.shape_cast %26 : vector<16x128xf32> to vector<2x8x128xf32>
      %cst_14 = arith.constant dense<0.000000e+00> : vector<8x128xf32>
      %28 = vector.multi_reduction <add>, %27, %cst_14 [0] : vector<2x8x128xf32> to vector<8x128xf32>
      %29 = arith.addf %17, %28 : vector<8x128xf32>
      %c0_15 = arith.constant 0 : index
      %c0_16 = arith.constant 0 : index
      %30 = vector.load %arg5[%c0_15, %c0_16] : memref<8x128xf32, #tpu.memory_space<vmem>>, vector<8x128xf32>
      tpu.vector_store %arg5[%c0_15, %c0_16], %29 {strides = array<i32>} : memref<8x128xf32, #tpu.memory_space<vmem>>, vector<8x128xf32>,
    } else {
    }
    %c0_i32_5 = arith.constant 0 : i32
    %11 = arith.cmpi slt, %1, %c0_i32_5 : i32
    %12 = arith.extui %11 : i1 to i32
    %c0_i32_6 = arith.constant 0 : i32
    %13 = arith.cmpi ne, %12, %c0_i32_6 : i32
    scf.if %13 {
      %c0 = arith.constant 0 : index
      %c0_9 = arith.constant 0 : index
      %17 = vector.load %arg6[%c0, %c0_9] : memref<8x128xf32, #tpu.memory_space<vmem>>, vector<8x128xf32>
      %c0_10 = arith.constant 0 : index
      %c0_11 = arith.constant 0 : index
      %18 = vector.load %arg4[%c0_10, %c0_11] : memref<8x128xf32, #tpu.memory_space<vmem>>, vector<8x128xf32>
      %19 = math.log %18 : vector<8x128xf32>
      %20 = vector.shape_cast %19 : vector<8x128xf32> to vector<1x8x128xf32>
      %cst = arith.constant dense<0.000000e+00> : vector<8x128xf32>
      %21 = vector.multi_reduction <add>, %20, %cst [0] : vector<1x8x128xf32> to vector<8x128xf32>
      %22 = arith.addf %17, %21 : vector<8x128xf32>
      %c0_12 = arith.constant 0 : index
      %c0_13 = arith.constant 0 : index
      %23 = vector.load %arg6[%c0_12, %c0_13] : memref<8x128xf32, #tpu.memory_space<vmem>>, vector<8x128xf32>
      tpu.vector_store %arg6[%c0_12, %c0_13], %22 {strides = array<i32>} : memref<8x128xf32, #tpu.memory_space<vmem>>, vector<8x128xf32>,
    } else {
    }
    %c0_i32_7 = arith.constant 0 : i32
    %14 = arith.cmpi eq, %1, %c0_i32_7 : i32
    %15 = arith.extui %14 : i1 to i32
    %c0_i32_8 = arith.constant 0 : i32
    %16 = arith.cmpi ne, %15, %c0_i32_8 : i32
    scf.if %16 {
      %c0 = arith.constant 0 : index
      %c0_9 = arith.constant 0 : index
      %17 = vector.load %arg6[%c0, %c0_9] : memref<8x128xf32, #tpu.memory_space<vmem>>, vector<8x128xf32>
      %18 = tpu.iota {dimensions = array<i32: 0>} : vector<8x128xi32>
      %c3_i32 = arith.constant 3 : i32
      %19 = vector.broadcast %c3_i32 : i32 to vector<8x128xi32>
      %20 = arith.cmpi slt, %18, %19 : vector<8x128xi32>
      %c0_10 = arith.constant 0 : index
      %c0_11 = arith.constant 0 : index
      %21 = vector.load %arg4[%c0_10, %c0_11] : memref<8x128xf32, #tpu.memory_space<vmem>>, vector<8x128xf32>
      %cst = arith.constant 1.000000e+00 : f32
      %22 = vector.broadcast %cst : f32 to vector<8x128xf32>
      %23 = arith.select %20, %21, %22 : vector<8x128xi1>, vector<8x128xf32>
      %24 = math.log %23 : vector<8x128xf32>
      %25 = vector.shape_cast %24 : vector<8x128xf32> to vector<1x8x128xf32>
      %cst_12 = arith.constant dense<0.000000e+00> : vector<8x128xf32>
      %26 = vector.multi_reduction <add>, %25, %cst_12 [0] : vector<1x8x128xf32> to vector<8x128xf32>
      %27 = arith.addf %17, %26 : vector<8x128xf32>
      %c0_13 = arith.constant 0 : index
      %c0_14 = arith.constant 0 : index
      %28 = vector.load %arg6[%c0_13, %c0_14] : memref<8x128xf32, #tpu.memory_space<vmem>>, vector<8x128xf32>
      tpu.vector_store %arg6[%c0_13, %c0_14], %27 {strides = array<i32>} : memref<8x128xf32, #tpu.memory_space<vmem>>, vector<8x128xf32>,
    } else {
    }
    return
  }
  func.func @transform_0(%arg0: i32, %arg1: i32) -> (i32, i32) {
    %c1_i32 = arith.constant 1 : i32
    %0 = arith.muli %arg0, %c1_i32 : i32
    %1 = arith.addi %0, %arg1 : i32
    %c0_i32 = arith.constant 0 : i32
    %2 = arith.minsi %1, %c0_i32 : i32
    %c0_i32_0 = arith.constant 0 : i32
    %c0_i32_1 = arith.constant 0 : i32
    return %2, %c0_i32_0 : i32, i32
  }
  func.func @transform_1(%arg0: i32, %arg1: i32) -> (i32, i32) {
    %c1_i32 = arith.constant 1 : i32
    %0 = arith.muli %arg0, %c1_i32 : i32
    %1 = arith.addi %0, %arg1 : i32
    %c0_i32 = arith.constant 0 : i32
    %2 = arith.minsi %1, %c0_i32 : i32
    %c0_i32_0 = arith.constant 0 : i32
    %c0_i32_1 = arith.constant 0 : i32
    return %2, %c0_i32_0 : i32, i32
  }
  func.func @transform_2(%arg0: i32, %arg1: i32) -> (i32, i32) {
    %c1_i32 = arith.constant 1 : i32
    %0 = arith.muli %arg0, %c1_i32 : i32
    %1 = arith.addi %0, %arg1 : i32
    %c0_i32 = arith.constant 0 : i32
    %2 = arith.minsi %1, %c0_i32 : i32
    %c0_i32_0 = arith.constant 0 : i32
    %c0_i32_1 = arith.constant 0 : i32
    return %2, %c0_i32_0 : i32, i32
  }
  func.func @transform_3(%arg0: i32, %arg1: i32) -> (i32, i32) {
    %c0_i32 = arith.constant 0 : i32
    %c0_i32_0 = arith.constant 0 : i32
    return %arg0, %c0_i32 : i32, i32
  }
  func.func @transform_4(%arg0: i32, %arg1: i32) -> (i32, i32) {
    %c0_i32 = arith.constant 0 : i32
    %c0_i32_0 = arith.constant 0 : i32
    return %arg0, %c0_i32 : i32, i32
  }
}

</mosaic_0001>

<bundles_post_ra>
// kernel: tpu_custom_call.1
= control target key start
LH: loop header
LB: loop body
LE: loop exit
PB: predicated region body
PF: predicated region fallthrough
CT: control target
= control target key end

     0   :  { %10 = vsyncpa [#allocation3], 0  ;;  %s1245_s0 = inlined_call_operand.hbm [shape: f32[12,128], index: 0, kind: input, shape index: {}]   ;;  %s1246_s1 = inlined_call_operand.hbm [shape: f32[12,128], index: 1, kind: input, shape index: {}]   ;;  %s1247_s2 = inlined_call_operand.vmem [shape: f32[3,128], index: 2, kind: input, shape index: {}]   ;;  %s1248_s3 = inlined_call_operand.hbm [shape: f32[16,128], index: 3, kind: output, shape index: {0}]   ;;  %s1249_s4 = inlined_call_operand.hbm [shape: f32[16,128], index: 4, kind: output, shape index: {1}]  }
   0x1   :  { %12 = vsyncpa [#allocation3 + $0x1], 0 }
   0x2   :  { %13 = vsyncpa [#allocation6], 0 }
   0x3   :  { %15 = vsyncpa [#allocation6 + $0x1], 0 }
   0x4   :  { %16 = vsyncpa [#allocation4], 0 }
   0x5   :  { %18 = vsyncpa [#allocation4 + $0x1], 0 }
   0x6   :  { %19 = vsyncpa [#allocation9], 0 }
   0x7   :  { %21 = vsyncpa [#allocation9 + $0x1], 0  ;;  %s970_s15 = smov 0   ;;  %s972_s16 = smov 0  }
   0x8   :  { %s974_s17 = smov 0   ;;  %s976_s18 = smov 0  }
   0x9   :  { %s978_s19 = smov 0   ;;  %s980_s20 = smov 0  }
   0xa   :  { %s982_s21 = smov 0   ;;  %s984_s22 = smov 0  }
   0xb LB: > { %s605_s23 = sadd.s32 4294967295, %s936_s22   ;;  %s606_s24 = sadd.s32 4294967294, %s936_s22   ;;  %s936_s22 = sphi %s984_s22, %s27_s22   ;;  %s932_s21 = sphi %s982_s21, %s1268_s21   ;;  %s928_s20 = sphi %s980_s20, %s1267_s20   ;;  %s924_s19 = sphi %s978_s19, %s1235_s19   ;;  %s920_s18 = sphi %s976_s18, %s1266_s18   ;;  %s916_s17 = sphi %s974_s17, %s1265_s17   ;;  %s912_s16 = sphi %s972_s16, %s1264_s16   ;;  %s908_s15 = sphi %s970_s15, %s1263_s15  }
   0xc   : > { %s39_s25 = sadd.s32 1, %s932_s21  ;;  %p905_p1 = scmp.ne.s32.totalorder %s924_s19, 0 }
   0xd   : > { %p41_p0 = scmp.ge.s32.totalorder %s39_s25, 2  ;;  %p60_p2 = scmp.eq.s32.totalorder %s936_s22, 0 }
   0xe   : > { %p65_p3 = scmp.ne.s32.totalorder %s924_s19, %s920_s18  ;;  %p66_p5 = scmp.eq.s32.totalorder %s605_s23, 0 }
   0xf   : > { %s1270_s25 = smov (%p41_p0, %s39_s25), 0  ;;  %p1016_p4 = por %p905_p1, %p60_p2 }
  0x10   : > { %p1020_p6 = por %p66_p5, %p65_p3  ;;  %s139_s28 = ssub.s32 %s932_s21, %s1270_s25 }
  0x11   : > { %p140_p7 = scmp.eq.s32.totalorder %s139_s28, 0  ;;  %s142_s29 = sadd.s32 1, %s916_s17 }
  0x12   : > { %s1253_s27 = scalar_select %p1020_p6, 1, 0 }
  0x13   : > { %s1028_s30 = scalar_select %p140_p7, %s916_s17, %s142_s29  }
  0x14   : > { %p152_p8 = scmp.ne.s32.totalorder %s916_s17, %s912_s16  ;;  %p153_p9 = scmp.eq.s32.totalorder %s605_s23, 1 }
  0x15   : > { %p158_p10 = scmp.ne.s32.totalorder %s912_s16, %s908_s15  ;;  %p159_p11 = scmp.eq.s32.totalorder %s606_s24, 1 }
  0x16   : > { %p1034_p12 = por %p153_p9, %p152_p8  ;;  %p656_p1 = scmp.lt.s32.totalorder %s936_s22, 2 }
  0x17   : > { %p1039_p0 = por %p159_p11, %p158_p10  ;;  %s938_s7 = smov [#allocation2]  }
  0x18   : > { %s1254_s5 = scalar_select %p1034_p12, 1, 0 }
  0x19   : > { %s1255_s6 = scalar_select %p1039_p0, 1, 0 }
  0x1a   : > { %s219_s8 = sshll.u32 %s938_s7, 4  ;;  %p1046_p2 = pnand %p656_p1, %p1016_p4  ;;  %s220_s8 = int_to_ptr.vmem [resolvable:$true] %s219_s8 }
  0x1b   : > { %s737_s12 = scalar_lea.hbm %s1245_s0, 256 }
  0x1c   : > { %p738_p3 = scmp.ne.s32.totalorder %s1245_s0, %s737_s12  ;;  %p739_p5 = pneg %p1046_p2 }
  0x1d   : > { %p744_p8 = scmp.lt.u32.totalorder %s737_s12, %s737_s12  ;;  %p746_p9 = scmp.lt.u32.totalorder %s737_s12, %s1245_s0 }
  0x1e   : > { %p740_p7 = pnand %p739_p5, %p738_p3 }
  0x1f   : > { %p747_p10 = por %p746_p9, %p744_p8 }
  0x20   : > { %p741_p4 = pneg %p740_p7 }
  0x22   : > { %p748_p11 = pnand %p747_p10, %p741_p4 }
  0x24   : > { %751 = shalt.err (!%p748_p11)
}
  0x25   : > { %s752_s24 = scalar_lea.vmem %s220_s8, 256  ;;  %s759_s26 = scalar_lea.vmem %s220_s8, 512 }
  0x26   : > { %p753_p1 = scmp.ne.s32.totalorder %s220_s8, %s752_s24  ;;  %p760_p12 = scmp.lt.s32.totalorder %s220_s8, %s220_s8 }
  0x27   : > { %p761_p6 = scmp.lt.s32.totalorder %s759_s26, %s752_s24 }
  0x28   : > { %p755_p13 = pnand %p753_p1, %p739_p5 }
  0x29   : > { %p762_p3 = por %p761_p6, %p760_p12 }
  0x2a   : > { %p756_p0 = pneg %p755_p13 }
  0x2c   : > { %p763_p7 = pnand %p762_p3, %p756_p0 }
  0x2e   : > { %766 = shalt.err (!%p763_p7)
}
  0x2f   : > { %s939_s28 = smov 128   ;;  %s940_s29 = smov 8  }
  0x30   : > { %645 = dma.hbm_to_vmem [thread:$0]  (!%p1046_p2), %s1245_s0, 256, %s220_s8, [#allocation3], %s939_s28, %s939_s28, %s940_s29  }
  0x31   : > { %p615_p13 = scmp.ge.s32.totalorder %s936_s22, 1  ;;  %p270_p4 = scmp.lt.s32.totalorder %s936_s22, 3 }
  0x32   : > { %s941_s12 = smov [#allocation5]   ;;  %s767_s23 = scalar_lea.hbm %s1246_s1, 256 }
  0x33   : > { %p1077_p8 = pnand %p615_p13, %p270_p4  ;;  %s243_s13 = sshll.u32 %s941_s12, 4  ;;  %s244_s13 = int_to_ptr.vmem [resolvable:$true] %s243_s13 }
  0x34   : > { %p768_p6 = scmp.ne.s32.totalorder %s1246_s1, %s767_s23  ;;  %p774_p9 = scmp.lt.u32.totalorder %s767_s23, %s767_s23 }
  0x35   : > { %s1257_s11 = scalar_select %p1077_p8, 1, 0 }
  0x36   : > { %p770_p12 = pnand %p768_p6, %p739_p5  ;;  %p776_p10 = scmp.lt.u32.totalorder %s767_s23, %s1246_s1 }
  0x38   : > { %p771_p0 = pneg %p770_p12  ;;  %p777_p11 = por %p776_p10, %p774_p9 }
  0x3a   : > { %p778_p1 = pnand %p777_p11, %p771_p0 }
  0x3c   : > { %781 = shalt.err (!%p778_p1)
}
  0x3d   : > { %s782_s10 = scalar_lea.vmem %s244_s13, 256  ;;  %s789_s12 = scalar_lea.vmem %s244_s13, 512 }
  0x3e   : > { %p783_p3 = scmp.ne.s32.totalorder %s244_s13, %s782_s10  ;;  %p790_p4 = scmp.lt.s32.totalorder %s244_s13, %s244_s13 }
  0x3f   : > { %p791_p8 = scmp.lt.s32.totalorder %s789_s12, %s782_s10 }
  0x40   : > { %p785_p7 = pnand %p783_p3, %p739_p5 }
  0x41   : > { %p792_p6 = por %p791_p8, %p790_p4 }
  0x42   : > { %p786_p13 = pneg %p785_p7 }
  0x44   : > { %p793_p12 = pnand %p792_p6, %p786_p13 }
  0x46   : > { %796 = shalt.err (!%p793_p12)
}
  0x47   : > { %648 = dma.hbm_to_vmem [thread:$0]  (!%p1046_p2), %s1246_s1, 256, %s244_s13, [#allocation6], %s939_s28, %s939_s28, %s940_s29  }
  0x48   : > { %p1258_p0 = scmp.ne.s32.totalorder %s1257_s11, 0 }
  0x49   : > { %s276_s23 = sand.u32 (!%p1258_p0), 1, %s924_s19   ;;  %p1259_p5 = scmp.ne.s32.totalorder (!%p1258_p0), %s1253_s27, 0 }
  0x4a   : > { %274 = sbr.rel (%p1258_p0) target bundleno = 203 (0xcb), region = 32  ;;  %s616_s24 = sshll.u32 (!%p1258_p0), %s276_s23, 4 }
  0x4b   : > { %s277_s26 = scalar_lea.sflag (!%p1258_p0), [#allocation3], %s276_s23  ;;  %s1107_s8 = scalar_lea.vmem (!%p1258_p0), [#allocation2], %s616_s24 }
  0x51   : > { %890 = dma.done.wait (%p1259_p5), %s277_s26, 256  }
  0x52   : > { %892 = vsyncadd (%p1259_p5), %s277_s26, 4294967040  ;;  %s286_s9 = scalar_lea.sflag [#allocation6], %s276_s23  ;;  %s1113_s7 = scalar_lea.vmem [#allocation5], %s616_s24 }
  0x53   : > { %894 = dma.done.wait (%p1259_p5), %s286_s9, 256  }
  0x54   : > { %896 = vsyncadd (%p1259_p5), %s286_s9, 4294967040  ;;  %s1120_s28 = sand.u32 1, %s912_s16   ;;  %p343_p2 = scmp.lt.s32.totalorder %s928_s20, 0  ;;  %v942_v0 = vmov 0.0  }
  0x55   : > { %s618_s29 = sshll.u32 %s1120_s28, 3  ;;  %p622_p9 = scmp.ge.s32.totalorder %s928_s20, 0 }
  0x56   : > { %s344_s11 = scalar_select %p343_p2, %s928_s20, 0 }
  0x57   : > { %s1125_s13 = scalar_lea.vmem [#allocation7], %s618_s29  ;;  %s1128_s10 = scalar_lea.vmem [#allocation8], %s618_s29  ;;  %v370_v1 = vld [vmem:[%s1107_s8] sm:$0xff] (!%p622_p9)  ;;  %v371_v2 = vld [vmem:[%s1107_s8 + $0x8] sm:$0xff] (!%p622_p9) }
  0x58   : > { %363 = vst [vmem:[%s1125_s13] sm:$0xff] %v942_v0  ;;  %364 = vst [vmem:[%s1128_s10] sm:$0xff] %v942_v0  ;;  %s620_s27 = sshll.u32 %s344_s11, 1  ;;  %368 = sbr.rel (%p622_p9) target bundleno = 99 (0x63), region = 48  ;;  %v372_v3 = vld [vmem:[%s1113_s7] sm:$0xff] (!%p622_p9)  ;;  %v373_v4 = vld [vmem:[%s1113_s7 + $0x8] sm:$0xff] (!%p622_p9) }
  0x59   : > { %p348_p8 = scmp.lt.s32.totalorder %s620_s27, 0  ;;  %v374_v5 = vsub.f32 (!%p622_p9), %v370_v1, %v372_v3  ;;  %v375_v6 = vsub.f32 (!%p622_p9), %v371_v2, %v373_v4 }
  0x5b   : > { %s1272_s27 = smov (!%p348_p8, %s620_s27), 0  ;;  %v376_v7 = vmul.f32 (!%p622_p9), %v374_v5, %v374_v5  ;;  %v377_v8 = vmul.f32 (!%p622_p9), %v375_v6, %v375_v6 }
  0x5c   : > { %s621_s12 = sshll.u32 %s1272_s27, 2 }
  0x5d   : > { %s1134_s23 = scalar_lea.vmem %s1247_s2, %s621_s12  ;;  %v378_v10 = vadd.f32 (!%p622_p9), %v377_v8, %v376_v7 }
  0x5f   : > { %v369_v9 = vld [vmem:[%s1125_s13] sm:$0xff] }
  0x60   : > { %v379_v11 = vadd.f32 %v378_v10, %v369_v9 }
  0x62   : > { %380 = vst [vmem:[%s1125_s13] sm:$0xff] %v379_v11 }
  0x63 PF: > { %p623_p10 = scmp.ne.s32.totalorder %s928_s20, 0 }
  0x64   : > { %v386_v12 = vlaneseq (!%p623_p10)  ;;  %v391_v13 = vld [vmem:[%s1107_s8] sm:$0xff] (!%p623_p10)  ;;  %v392_v14 = vld [vmem:[%s1107_s8 + $0x8] sm:$0xff] (!%p623_p10) }
  0x65   : > { %384 = sbr.rel (%p623_p10) target bundleno = 115 (0x73), region = 52  ;;  %v393_v15 = vld [vmem:[%s1113_s7] sm:$0xff] (!%p623_p10)  ;;  %v394_v16 = vld [vmem:[%s1113_s7 + $0x8] sm:$0xff] (!%p623_p10) }
  0x66   : > { %v387_v17 = vshrl.u32 (!%p623_p10), %v386_v12, 7  ;;  %v395_v18 = vsub.f32 (!%p623_p10), %v391_v13, %v393_v15  ;;  %v396_v19 = vsub.f32 (!%p623_p10), %v392_v14, %v394_v16 }
  0x68   : > { %v388_v20 = vadd.s32 (!%p623_p10), 8, %v387_v17  ;;  %v399_v21 = vmul.f32 (!%p623_p10), %v395_v18, %v395_v18 }
  0x69   : > { %v385_v24 = vld [vmem:[%s1125_s13] sm:$0xff] (!%p623_p10) }
  0x6a   : > { %vm390_vm0 = vcmp.lt.s32.totalorder (!%p623_p10), %v388_v20, 12 }
  0x6b   : > { %v398_v22 = vsel (!%p623_p10), %vm390_vm0, %v396_v19, 0.0 }
  0x6c   : > { %v400_v23 = vmul.f32 %v398_v22, %v398_v22 }
  0x6e   : > { %v401_v25 = vadd.f32 %v400_v23, %v399_v21 }
  0x70   : > { %v402_v26 = vadd.f32 %v401_v25, %v385_v24 }
  0x72   : > { %403 = vst [vmem:[%s1125_s13] sm:$0xff] %v402_v26 }
  0x73 PF: > { %406 = sbr.rel (%p622_p9) target bundleno = 132 (0x84), region = 56  ;;  %v408_v27 = vld [vmem:[%s1134_s23] sm:$0xff] (!%p622_p9)  ;;  %v407_v29 = vld [vmem:[%s1128_s10] sm:$0xff] (!%p622_p9) }
  0x74   : > { %733 = vlog2.f32 (!%p622_p9), %v408_v27 }
  0x7e   : > { %v734_v28 = vpop.eup %733 }
  0x7f   : > { %v410_v30 = vmul.f32 0.6931472, %v734_v28 }
  0x81   : > { %v412_v31 = vadd.f32 %v410_v30, %v407_v29 }
  0x83   : > { %413 = vst [vmem:[%s1128_s10] sm:$0xff] %v412_v31 }
  0x84 PF: > { %416 = sbr.rel (%p623_p10) target bundleno = 154 (0x9a), region = 60  ;;  %v418_v32 = vlaneseq (!%p623_p10)  ;;  %v421_v34 = vld [vmem:[%s1134_s23] sm:$0xff] (!%p623_p10) }
  0x86   : > { %v419_v33 = vshrl.u32 (!%p623_p10), %v418_v32, 7 }
  0x88   : > { %vm420_vm1 = vcmp.lt.s32.totalorder (!%p623_p10), %v419_v33, 3 }
  0x89   : > { %v422_v35 = vsel (!%p623_p10), %vm420_vm1, %v421_v34, 1.0 }
  0x8a   : > { %735 = vlog2.f32 (!%p623_p10), %v422_v35  ;;  %v417_v37 = vld [vmem:[%s1128_s10] sm:$0xff] (!%p623_p10) }
  0x94   : > { %v736_v36 = vpop.eup %735 }
  0x95   : > { %v424_v38 = vmul.f32 0.6931472, %v736_v36 }
  0x97   : > { %v426_v39 = vadd.f32 %v424_v38, %v417_v37 }
  0x99   : > { %427 = vst [vmem:[%s1128_s10] sm:$0xff] %v426_v39 }
  0x9a PF: > { %s628_s24 = sshll.u32 %s928_s20, 7  ;;  %s447_s7 = sshll.u32 %s1125_s13, 4  ;;  %s448_s7 = int_to_ptr.vmem [resolvable:$true] %s447_s7 }
  0x9b   : > { %s1170_s9 = scalar_lea.hbm %s1248_s3, %s628_s24  ;;  %s429_s29 = scalar_lea.sflag [#allocation4], %s1120_s28 }
  0x9c   : > { %s797_s11 = scalar_lea.vmem %s448_s7, 128  ;;  %p1260_p1 = scmp.ne.s32.totalorder %s1254_s5, 0 }
  0x9d   : > { %p798_p11 = scmp.ne.s32.totalorder %s448_s7, %s797_s11  ;;  %s943_s27 = smov [#allocation7]  }
  0x9e   : > { %s801_s12 = sshll.u32 %s943_s27, 4  ;;  %s802_s12 = int_to_ptr.vmem [resolvable:$false] %s801_s12 }
  0x9f   : > { %p799_p3 = pnand %p798_p11, %p1260_p1  ;;  %s803_s14 = scalar_lea.vmem %s802_s12, 256 }
  0xa0   : > { %p804_p13 = scmp.lt.s32.totalorder %s448_s7, %s802_s12  ;;  %p805_p4 = scmp.lt.s32.totalorder %s803_s14, %s797_s11 }
  0xa1   : > { %p800_p7 = pneg %p799_p3 }
  0xa2   : > { %p806_p6 = por %p805_p4, %p804_p13 }
  0xa4   : > { %p807_p12 = pnand %p806_p6, %p800_p7 }
  0xa6   : > { %810 = shalt.err (!%p807_p12)
}
  0xa7   : > { %s811_s13 = scalar_lea.hbm %s1170_s9, 128  ;;  %s815_s26 = scalar_lea.hbm %s1248_s3, 256 }
  0xa8   : > { %p812_p0 = scmp.ne.s32.totalorder %s1170_s9, %s811_s13  ;;  %p816_p8 = scmp.lt.u32.totalorder %s1170_s9, %s1248_s3 }
  0xa9   : > { %p817_p9 = scmp.lt.u32.totalorder %s815_s26, %s811_s13  ;;  %p819_p11 = scmp.lt.u32.totalorder %s811_s13, %s1170_s9 }
  0xaa   : > { %p813_p5 = pnand %p812_p0, %p1260_p1 }
  0xab   : > { %p818_p10 = por %p817_p9, %p816_p8 }
  0xac   : > { %p814_p2 = pneg %p813_p5 }
  0xad   : > { %p820_p3 = por %p819_p11, %p818_p10 }
  0xaf   : > { %p821_p7 = pnand %p820_p3, %p814_p2 }
  0xb1   : > { %824 = shalt.err (!%p821_p7)
}
  0xb2   : > { %638 = dma.vmem_to_hbm [thread:$0]  (%p1260_p1), %s448_s7, 128, %s1170_s9, %s429_s29  }
  0xb3   : > { %s1196_s14 = scalar_lea.hbm %s1249_s4, %s628_s24  ;;  %s460_s18 = sshll.u32 %s1128_s10, 4  ;;  %s461_s18 = int_to_ptr.vmem [resolvable:$true] %s460_s18 }
  0xb4   : > { %s434_s13 = scalar_lea.sflag [#allocation9], %s1120_s28  ;;  %s825_s23 = scalar_lea.vmem %s461_s18, 128 }
  0xb5   : > { %p826_p13 = scmp.ne.s32.totalorder %s461_s18, %s825_s23  ;;  %s944_s26 = smov [#allocation8]  }
  0xb6   : > { %s829_s8 = sshll.u32 %s944_s26, 4  ;;  %s830_s8 = int_to_ptr.vmem [resolvable:$false] %s829_s8 }
  0xb7   : > { %p827_p4 = pnand %p826_p13, %p1260_p1  ;;  %s831_s27 = scalar_lea.vmem %s830_s8, 256 }
  0xb8   : > { %p832_p12 = scmp.lt.s32.totalorder %s461_s18, %s830_s8  ;;  %p833_p0 = scmp.lt.s32.totalorder %s831_s27, %s825_s23 }
  0xb9   : > { %p828_p6 = pneg %p827_p4 }
  0xba   : > { %p834_p5 = por %p833_p0, %p832_p12 }
  0xbc   : > { %p835_p2 = pnand %p834_p5, %p828_p6 }
  0xbe   : > { %838 = shalt.err (!%p835_p2)
}
  0xbf   : > { %s839_s20 = scalar_lea.hbm %s1196_s14, 128  ;;  %s843_s24 = scalar_lea.hbm %s1249_s4, 256 }
  0xc0   : > { %p840_p8 = scmp.ne.s32.totalorder %s1196_s14, %s839_s20  ;;  %p844_p11 = scmp.lt.u32.totalorder %s1196_s14, %s1249_s4 }
  0xc1   : > { %p845_p3 = scmp.lt.u32.totalorder %s843_s24, %s839_s20  ;;  %p847_p13 = scmp.lt.u32.totalorder %s839_s20, %s1196_s14 }
  0xc2   : > { %p841_p9 = pnand %p840_p8, %p1260_p1 }
  0xc3   : > { %p846_p7 = por %p845_p3, %p844_p11 }
  0xc4   : > { %p842_p10 = pneg %p841_p9 }
  0xc5   : > { %p848_p4 = por %p847_p13, %p846_p7 }
  0xc7   : > { %p849_p6 = pnand %p848_p4, %p842_p10 }
  0xc9   : > { %852 = shalt.err (!%p849_p6)
}
  0xca   : > { %639 = dma.vmem_to_hbm [thread:$0]  (%p1260_p1), %s461_s18, 128, %s1196_s14, %s434_s13  }
  0xcb PF: > { %s472_s29 = sand.u32 1, %s908_s15   ;;  %p1261_p12 = scmp.ne.s32.totalorder %s1255_s6, 0 }
  0xcc   : > { %p1262_p0 = scmp.ge.s32.totalorder %s936_s22, 2  ;;  %s473_s11 = scalar_lea.sflag [#allocation4], %s472_s29 }
  0xce   : > { %p650_p5 = pnand %p1262_p0, %p1261_p12 }
  0xd0   : > { %898 = dma.done.wait (!%p650_p5), %s473_s11, 128  }
  0xd1   : > { %900 = vsyncadd (!%p650_p5), %s473_s11, 4294967168  ;;  %s482_s12 = scalar_lea.sflag [#allocation9], %s472_s29 }
  0xd2   : > { %902 = dma.done.wait (!%p650_p5), %s482_s12, 128  }
  0xd3   : > { %904 = vsyncadd (!%p650_p5), %s482_s12, 4294967168  ;;  %s27_s22 = sadd.s32 1, %s936_s22   ;;  %s1263_s15 = smov %s912_s16 }
  0xd4   : > { %p24_p2 = scmp.ge.s32.totalorder %s27_s22, 4   ;;  %s1264_s16 = smov %s916_s17 }
  0xd5   : > { %s1265_s17 = smov %s1028_s30  ;;  %s1266_s18 = smov %s924_s19 }
  0xd6   : > { %s1235_s19 = smov 0   ;;  %s1267_s20 = smov %s932_s21 }
  0xd7   : > { %s1268_s21 = smov %s1270_s25  ;;  %26 = sbr.rel (!%p24_p2) target bundleno = 11 (0xb), region = 130 }
  0xde   :  { %487 = vsyncpa [#allocation3], 1 }
  0xdf   :  { %489 = vsyncpa [#allocation3 + $0x1], 1 }
  0xe0   :  { %490 = vsyncpa [#allocation6], 1 }
  0xe1   :  { %492 = vsyncpa [#allocation6 + $0x1], 1 }
  0xe2   :  { %493 = vsyncpa [#allocation4], 1 }
  0xe3   :  { %495 = vsyncpa [#allocation4 + $0x1], 1 }
  0xe4   :  { %496 = vsyncpa [#allocation9], 1 }
  0xe5   :  { %498 = vsyncpa [#allocation9 + $0x1], 1 }

</bundles_post_ra>
